<compile_context>
chip_gen: v5e
topology: v5e:2x2
jax: 0.10.0
libtpu: 0.0.40
codegen_flags: <defaults>
</compile_context>

<pallas_src>
import functools
import math

import jax
import jax.numpy as jnp
from jax import lax
from jax.experimental import pallas as pl
from jax.experimental.pallas import tpu as pltpu

_LANES = 128
_D = 3
_C = 9                      # packed channels: d0 d1 d2 l00 l10 l11 l20 l21 l22
_LOG_2PI = math.log(2.0 * math.pi)


def _nll_kernel(packed_ref, out_ref, acc_ref, *, n_valid, tr, steps):
    c = pl.program_id(0)          # core (parallel) axis
    i = pl.program_id(1)          # reduction (arbitrary) axis

    @pl.when(i == 0)
    def _():
        acc_ref[...] = jnp.zeros_like(acc_ref)

    # Validity mask built in-kernel from iota (no mask streamed from HBM).
    row = lax.broadcasted_iota(jnp.int32, (tr, _LANES), 0)
    lane = lax.broadcasted_iota(jnp.int32, (tr, _LANES), 1)
    blk = c * steps + i
    valid = (blk * tr + row) * _LANES + lane < n_valid

    d0 = packed_ref[0]
    d1 = packed_ref[1]
    d2 = packed_ref[2]
    l00 = packed_ref[3]
    l10 = packed_ref[4]
    l11 = packed_ref[5]
    l20 = packed_ref[6]
    l21 = packed_ref[7]
    l22 = packed_ref[8]

    # Forward substitution: solve L x = diff (L lower-triangular 3x3).
    # Padded lanes carry 1.0 on the diagonal (set at pack time), so divides
    # and log stay finite without per-channel selects.
    x0 = d0 / l00
    x1 = (d1 - l10 * x0) / l11
    x2 = (d2 - l20 * x0 - l21 * x1) / l22
    mahal = x0 * x0 + x1 * x1 + x2 * x2

    # log|Sigma| = 2 * log(l00*l11*l22): one EUP log per sample.
    log_det = 2.0 * jnp.log(l00 * l11 * l22)

    per = 0.5 * (mahal + log_det + _D * _LOG_2PI)
    per = jnp.where(valid, per, 0.0)

    # Fold the sublane-group reduction into every step: (tr,128)->(tr//8,8,128)
    # keeps the native (8,128) tile intact; the axis-0 sum is plain VALU adds
    # into a single-vreg-group accumulator.
    acc_ref[...] += jnp.sum(per.reshape(tr // 8, 8, _LANES), axis=0)

    @pl.when(i == pl.num_programs(1) - 1)
    def _():
        out_ref[...] = jnp.sum(acc_ref[...], axis=0, keepdims=True)   # (1, 128)


def _device_defaults():
    """(max tile rows, preferred core split) per TPU generation."""
    try:
        kind = jax.devices()[0].device_kind.lower()
    except Exception:
        return 1024, 1
    if "v7" in kind:
        return 2048, 2          # 2 TCs / chip, 3.2 TB/s HBM, 64 MiB VMEM
    return 1024, 1              # v5e / v6e: single TensorCore


def nll_loss(y_true, y_pred_mean, pred_cholesky_L, *,
             max_rows_per_block=None, n_cores=None):
    """Negative log-likelihood of a 3-D Gaussian, mean over (B, S, J)."""
    if not (y_true.shape == y_pred_mean.shape
            and y_true.shape[:-1] == pred_cholesky_L.shape[:-2]
            and pred_cholesky_L.shape[-2:] == (3, 3)):
        raise ValueError("Shape mismatch in NLLLoss inputs.")

    B, S, J, D = y_true.shape
    N = B * S * J

    auto_tr, auto_cores = _device_defaults()
    max_tr = auto_tr if max_rows_per_block is None else max_rows_per_block
    max_tr = max(8, ((max_tr + 7) // 8) * 8)

    R = ((pl.cdiv(N, _LANES) + 7) // 8) * 8        # rows of 128, sublane-rounded
    if R <= max_tr:
        tr, cores, steps = R, 1, 1
    else:
        tr = max_tr
        n_blocks = pl.cdiv(R, tr)
        cores = auto_cores if n_cores is None else n_cores
        cores = max(1, min(cores, n_blocks))       # 2-way split only on v7x
        steps = pl.cdiv(n_blocks, cores)
    rp = cores * steps * tr                        # padded rows
    npad = rp * _LANES                             # padded sample count
    if npad >= 2**31:
        raise ValueError("Sample count too large for int32 index math.")

    # Fused 9-channel SoA pack: diff precomputed here, only lower-triangle of L
    # kept, diagonal channels of padded rows set to 1.0, and the layout
    # transform is a single reshape + transpose.
    # TODO(synk): emit channel-major (SoA) data upstream to drop this repack.
    f32 = jnp.float32
    diff = (y_true.astype(f32) - y_pred_mean.astype(f32)).reshape(N, 3)
    L = pred_cholesky_L.astype(f32).reshape(N, 3, 3)
    lower = jnp.concatenate([L[:, 0, 0:1], L[:, 1, 0:2], L[:, 2, 0:3]], axis=1)
    packed = jnp.concatenate([diff, lower], axis=1)                  # (N, 9)
    pad_row = jnp.zeros((_C,), f32).at[jnp.array([3, 5, 8])].set(1.0)
    packed = jnp.concatenate(
        [packed, jnp.broadcast_to(pad_row, (npad - N, _C))], axis=0)  # (npad, 9)
    packed = packed.reshape(rp, _LANES, _C).transpose(2, 0, 1)        # (9, rp, 128)

    kernel = functools.partial(_nll_kernel, n_valid=N, tr=tr, steps=steps)

    # Double-buffered 9-channel input block + tiny accumulator / temporaries.
    block_bytes = _C * tr * _LANES * 4
    vmem_need = 2 * block_bytes + (1 << 20)
    cp_kwargs = dict(dimension_semantics=("parallel", "arbitrary"))
    if vmem_need > (26 << 20):   # never fires for the generation defaults
        cp_kwargs["vmem_limit_bytes"] = min(vmem_need + (8 << 20), 56 << 20)

    partials = pl.pallas_call(
        kernel,
        out_shape=jax.ShapeDtypeStruct((1, cores * _LANES), jnp.float32),
        grid_spec=pltpu.PrefetchScalarGridSpec(
            num_scalar_prefetch=0,
            grid=(cores, steps),
            in_specs=[
                pl.BlockSpec((_C, tr, _LANES),
                             lambda c, i: (0, c * steps + i, 0)),
            ],
            out_specs=pl.BlockSpec((1, _LANES), lambda c, i: (0, c)),
            scratch_shapes=[pltpu.VMEM((8, _LANES), jnp.float32)],
        ),
        compiler_params=pltpu.CompilerParams(**cp_kwargs),
        cost_estimate=pl.CostEstimate(
            flops=25 * npad,
            transcendentals=npad,
            bytes_accessed=4 * _C * npad + 4 * cores * _LANES),
    )(packed)

    return jnp.sum(partials) / N


def _nll_reference(y_true, y_pred_mean, L):
    """Independent pure-JAX reference (solves with Sigma = L L^T)."""
    B, S, J, D = y_true.shape
    diff = (y_true - y_pred_mean)[..., None]                  # (B,S,J,3,1)
    sigma = L @ jnp.swapaxes(L, -1, -2)
    sol = jnp.linalg.solve(sigma, diff)
    mahal = jnp.sum(diff * sol, axis=(-1, -2))
    log_det = 2.0 * jnp.sum(jnp.log(jnp.diagonal(L, axis1=-2, axis2=-1)), axis=-1)
    per = 0.5 * (mahal + log_det + D * math.log(2.0 * math.pi))
    return jnp.mean(per)


def _make_inputs(key, B, S, J):
    k1, k2, k3 = jax.random.split(key, 3)
    y_true = jax.random.normal(k1, (B, S, J, 3), jnp.float32)
    y_pred_mean = jax.random.normal(k2, (B, S, J, 3), jnp.float32)
    # deterministic valid Cholesky factors: lower-triangular, positive diagonal
    A = 0.2 * jax.random.normal(k3, (B, S, J, 3, 3), jnp.float32)
    diag = jnp.abs(jnp.diagonal(A, axis1=-2, axis2=-1)) + 0.5
    L = jnp.tril(A, k=-1) + diag[..., :, None] * jnp.eye(3, dtype=jnp.float32)
    return y_true, y_pred_mean, L


if __name__ == "__main__":
    key = jax.random.PRNGKey(0)
    k_small, k_big = jax.random.split(key)

    # Small case (single block, single core).
    yt, ym, L = _make_inputs(k_small, 2, 4, 8)
    loss = jax.block_until_ready(nll_loss(yt, ym, L))
    ref = _nll_reference(yt, ym, L)
    assert jnp.allclose(loss, ref, rtol=1e-4, atol=1e-4), (loss, ref)

    # Larger case with device-tuned defaults (still one block at this size).
    yt2, ym2, L2 = _make_inputs(k_big, 2, 16, 80)   # N = 2560 samples
    loss2 = jax.block_until_ready(nll_loss(yt2, ym2, L2))
    ref2 = _nll_reference(yt2, ym2, L2)
    assert jnp.allclose(loss2, ref2, rtol=1e-4, atol=1e-4), (loss2, ref2)

    # Same data, forcing the multi-block / 2-core grid + padding path.
    loss3 = jax.block_until_ready(
        nll_loss(yt2, ym2, L2, max_rows_per_block=8, n_cores=2))
    assert jnp.allclose(loss3, ref2, rtol=1e-4, atol=1e-4), (loss3, ref2)

    print("KERNEL_OK")
</pallas_src>

<mosaic_0001>
module attributes {stable_mosaic.version = 11 : i64} {
  func.func @_nll_kernel(%arg0: i32, %arg1: i32, %arg2: memref<9x8x128xf32, #tpu.memory_space<vmem>>, %arg3: memref<1x128xf32, #tpu.memory_space<vmem>>, %arg4: memref<8x128xf32, #tpu.memory_space<vmem>>) attributes {dimension_semantics = [#tpu.dimension_semantics<parallel>, #tpu.dimension_semantics<arbitrary>], iteration_bounds = array<i64: 1, 1>, scalar_prefetch = 0 : i64, scratch_operands = 1 : i64, tpu.core_type = #tpu.core_type<tc>, window_params = [{transform_indices = @transform_0, window_bounds = array<i64: 9, 8, 128>}, {transform_indices = @transform_1, window_bounds = array<i64: 1, 128>}]} {
    %c0_i32 = arith.constant 0 : i32
    %0 = arith.cmpi eq, %arg1, %c0_i32 : i32
    %1 = arith.extui %0 : i1 to i32
    %c0_i32_0 = arith.constant 0 : i32
    %2 = arith.cmpi ne, %1, %c0_i32_0 : i32
    scf.if %2 {
      %cst_29 = arith.constant 0.000000e+00 : f32
      %67 = vector.broadcast %cst_29 : f32 to vector<8x128xf32>
      %c0_30 = arith.constant 0 : index
      %c0_31 = arith.constant 0 : index
      %68 = vector.load %arg4[%c0_30, %c0_31] : memref<8x128xf32, #tpu.memory_space<vmem>>, vector<8x128xf32>
      tpu.vector_store %arg4[%c0_30, %c0_31], %67 {strides = array<i32>} : memref<8x128xf32, #tpu.memory_space<vmem>>, vector<8x128xf32>,
    } else {
    }
    %3 = tpu.iota {dimensions = array<i32: 0>} : vector<8x128xi32>
    %4 = tpu.iota {dimensions = array<i32: 1>} : vector<8x128xi32>
    %c1_i32 = arith.constant 1 : i32
    %5 = arith.muli %arg0, %c1_i32 : i32
    %6 = arith.addi %5, %arg1 : i32
    %c8_i32 = arith.constant 8 : i32
    %7 = arith.muli %6, %c8_i32 : i32
    %8 = vector.broadcast %7 : i32 to vector<8x128xi32>
    %9 = arith.addi %8, %3 : vector<8x128xi32>
    %c128_i32 = arith.constant 128 : i32
    %10 = vector.broadcast %c128_i32 : i32 to vector<8x128xi32>
    %11 = arith.muli %9, %10 : vector<8x128xi32>
    %12 = arith.addi %11, %4 : vector<8x128xi32>
    %c64_i32 = arith.constant 64 : i32
    %13 = vector.broadcast %c64_i32 : i32 to vector<8x128xi32>
    %14 = arith.cmpi slt, %12, %13 : vector<8x128xi32>
    %c0 = arith.constant 0 : index
    %c0_1 = arith.constant 0 : index
    %c0_2 = arith.constant 0 : index
    %15 = vector.load %arg2[%c0, %c0_1, %c0_2] : memref<9x8x128xf32, #tpu.memory_space<vmem>>, vector<1x8x128xf32>
    %16 = vector.shape_cast %15 : vector<1x8x128xf32> to vector<8x128xf32>
    %c1 = arith.constant 1 : index
    %c0_3 = arith.constant 0 : index
    %c0_4 = arith.constant 0 : index
    %17 = vector.load %arg2[%c1, %c0_3, %c0_4] : memref<9x8x128xf32, #tpu.memory_space<vmem>>, vector<1x8x128xf32>
    %18 = vector.shape_cast %17 : vector<1x8x128xf32> to vector<8x128xf32>
    %c2 = arith.constant 2 : index
    %c0_5 = arith.constant 0 : index
    %c0_6 = arith.constant 0 : index
    %19 = vector.load %arg2[%c2, %c0_5, %c0_6] : memref<9x8x128xf32, #tpu.memory_space<vmem>>, vector<1x8x128xf32>
    %20 = vector.shape_cast %19 : vector<1x8x128xf32> to vector<8x128xf32>
    %c3 = arith.constant 3 : index
    %c0_7 = arith.constant 0 : index
    %c0_8 = arith.constant 0 : index
    %21 = vector.load %arg2[%c3, %c0_7, %c0_8] : memref<9x8x128xf32, #tpu.memory_space<vmem>>, vector<1x8x128xf32>
    %22 = vector.shape_cast %21 : vector<1x8x128xf32> to vector<8x128xf32>
    %c4 = arith.constant 4 : index
    %c0_9 = arith.constant 0 : index
    %c0_10 = arith.constant 0 : index
    %23 = vector.load %arg2[%c4, %c0_9, %c0_10] : memref<9x8x128xf32, #tpu.memory_space<vmem>>, vector<1x8x128xf32>
    %24 = vector.shape_cast %23 : vector<1x8x128xf32> to vector<8x128xf32>
    %c5 = arith.constant 5 : index
    %c0_11 = arith.constant 0 : index
    %c0_12 = arith.constant 0 : index
    %25 = vector.load %arg2[%c5, %c0_11, %c0_12] : memref<9x8x128xf32, #tpu.memory_space<vmem>>, vector<1x8x128xf32>
    %26 = vector.shape_cast %25 : vector<1x8x128xf32> to vector<8x128xf32>
    %c6 = arith.constant 6 : index
    %c0_13 = arith.constant 0 : index
    %c0_14 = arith.constant 0 : index
    %27 = vector.load %arg2[%c6, %c0_13, %c0_14] : memref<9x8x128xf32, #tpu.memory_space<vmem>>, vector<1x8x128xf32>
    %28 = vector.shape_cast %27 : vector<1x8x128xf32> to vector<8x128xf32>
    %c7 = arith.constant 7 : index
    %c0_15 = arith.constant 0 : index
    %c0_16 = arith.constant 0 : index
    %29 = vector.load %arg2[%c7, %c0_15, %c0_16] : memref<9x8x128xf32, #tpu.memory_space<vmem>>, vector<1x8x128xf32>
    %30 = vector.shape_cast %29 : vector<1x8x128xf32> to vector<8x128xf32>
    %c8 = arith.constant 8 : index
    %c0_17 = arith.constant 0 : index
    %c0_18 = arith.constant 0 : index
    %31 = vector.load %arg2[%c8, %c0_17, %c0_18] : memref<9x8x128xf32, #tpu.memory_space<vmem>>, vector<1x8x128xf32>
    %32 = vector.shape_cast %31 : vector<1x8x128xf32> to vector<8x128xf32>
    %33 = arith.divf %16, %22 : vector<8x128xf32>
    %34 = arith.mulf %24, %33 : vector<8x128xf32>
    %35 = arith.subf %18, %34 : vector<8x128xf32>
    %36 = arith.divf %35, %26 : vector<8x128xf32>
    %37 = arith.mulf %28, %33 : vector<8x128xf32>
    %38 = arith.subf %20, %37 : vector<8x128xf32>
    %39 = arith.mulf %30, %36 : vector<8x128xf32>
    %40 = arith.subf %38, %39 : vector<8x128xf32>
    %41 = arith.divf %40, %32 : vector<8x128xf32>
    %42 = arith.mulf %33, %33 : vector<8x128xf32>
    %43 = arith.mulf %36, %36 : vector<8x128xf32>
    %44 = arith.addf %42, %43 : vector<8x128xf32>
    %45 = arith.mulf %41, %41 : vector<8x128xf32>
    %46 = arith.addf %44, %45 : vector<8x128xf32>
    %47 = arith.mulf %22, %26 : vector<8x128xf32>
    %48 = arith.mulf %47, %32 : vector<8x128xf32>
    %49 = math.log %48 : vector<8x128xf32>
    %cst = arith.constant 2.000000e+00 : f32
    %50 = vector.broadcast %cst : f32 to vector<8x128xf32>
    %51 = arith.mulf %50, %49 : vector<8x128xf32>
    %52 = arith.addf %46, %51 : vector<8x128xf32>
    %cst_19 = arith.constant 5.51363134 : f32
    %53 = vector.broadcast %cst_19 : f32 to vector<8x128xf32>
    %54 = arith.addf %52, %53 : vector<8x128xf32>
    %cst_20 = arith.constant 5.000000e-01 : f32
    %55 = vector.broadcast %cst_20 : f32 to vector<8x128xf32>
    %56 = arith.mulf %55, %54 : vector<8x128xf32>
    %cst_21 = arith.constant 0.000000e+00 : f32
    %57 = vector.broadcast %cst_21 : f32 to vector<8x128xf32>
    %58 = arith.select %14, %56, %57 : vector<8x128xi1>, vector<8x128xf32>
    %c0_22 = arith.constant 0 : index
    %c0_23 = arith.constant 0 : index
    %59 = vector.load %arg4[%c0_22, %c0_23] : memref<8x128xf32, #tpu.memory_space<vmem>>, vector<8x128xf32>
    %60 = vector.shape_cast %58 : vector<8x128xf32> to vector<1x8x128xf32>
    %cst_24 = arith.constant dense<0.000000e+00> : vector<8x128xf32>
    %61 = vector.multi_reduction <add>, %60, %cst_24 [0] : vector<1x8x128xf32> to vector<8x128xf32>
    %62 = arith.addf %59, %61 : vector<8x128xf32>
    %c0_25 = arith.constant 0 : index
    %c0_26 = arith.constant 0 : index
    %63 = vector.load %arg4[%c0_25, %c0_26] : memref<8x128xf32, #tpu.memory_space<vmem>>, vector<8x128xf32>
    tpu.vector_store %arg4[%c0_25, %c0_26], %62 {strides = array<i32>} : memref<8x128xf32, #tpu.memory_space<vmem>>, vector<8x128xf32>,
    %c0_i32_27 = arith.constant 0 : i32
    %64 = arith.cmpi eq, %arg1, %c0_i32_27 : i32
    %65 = arith.extui %64 : i1 to i32
    %c0_i32_28 = arith.constant 0 : i32
    %66 = arith.cmpi ne, %65, %c0_i32_28 : i32
    scf.if %66 {
      %c0_29 = arith.constant 0 : index
      %c0_30 = arith.constant 0 : index
      %67 = vector.load %arg4[%c0_29, %c0_30] : memref<8x128xf32, #tpu.memory_space<vmem>>, vector<8x128xf32>
      %cst_31 = arith.constant dense<0.000000e+00> : vector<128xf32>
      %68 = vector.multi_reduction <add>, %67, %cst_31 [0] : vector<8x128xf32> to vector<128xf32>
      %69 = vector.shape_cast %68 : vector<128xf32> to vector<1x128xf32>
      %c0_32 = arith.constant 0 : index
      %c0_33 = arith.constant 0 : index
      %70 = vector.load %arg3[%c0_32, %c0_33] : memref<1x128xf32, #tpu.memory_space<vmem>>, vector<1x128xf32>
      tpu.vector_store %arg3[%c0_32, %c0_33], %69 {strides = array<i32>} : memref<1x128xf32, #tpu.memory_space<vmem>>, vector<1x128xf32>,
    } else {
    }
    return
  }
  func.func @transform_0(%arg0: i32, %arg1: i32) -> (i32, i32, i32) {
    %c1_i32 = arith.constant 1 : i32
    %0 = arith.muli %arg0, %c1_i32 : i32
    %1 = arith.addi %0, %arg1 : i32
    %c0_i32 = arith.constant 0 : i32
    %c0_i32_0 = arith.constant 0 : i32
    %c0_i32_1 = arith.constant 0 : i32
    return %c0_i32, %1, %c0_i32_0 : i32, i32, i32
  }
  func.func @transform_1(%arg0: i32, %arg1: i32) -> (i32, i32) {
    %c0_i32 = arith.constant 0 : i32
    %c0_i32_0 = arith.constant 0 : i32
    return %c0_i32, %arg0 : i32, i32
  }
}

</mosaic_0001>

<bundles_post_ra>
// kernel: tpu_custom_call.1
= control target key start
LH: loop header
LB: loop body
LE: loop exit
PB: predicated region body
PF: predicated region fallthrough
CT: control target
= control target key end

     0   :  { %6 = vsyncpa [#allocation4], 0  ;;  %s255_s0 = inlined_call_operand.hbm [shape: f32[9,8,128], index: 0, kind: input, shape index: {}]   ;;  %s256_s1 = inlined_call_operand.hbm [shape: f32[1,128], index: 1, kind: output, shape index: {}]  }
   0x1   :  { %7 = vsyncpa [#allocation5], 0  ;;  %s15_s8 = sshll.u32 %s255_s0, 4  ;;  %s223_s9 = smov [#allocation3]   ;;  %s16_s8 = int_to_ptr.hbm [resolvable:$true] %s15_s8 }
   0x2   :  { %s17_s10 = sshll.u32 %s223_s9, 4  ;;  %s224_s11 = smov 128   ;;  %s18_s10 = int_to_ptr.vmem [resolvable:$true] %s17_s10 }
   0x3   :  { %s225_s12 = smov 8  }
   0x4   :  { %23 = dma.hbm_to_vmem [thread:$0]  %s16_s8, 1152, %s18_s10, [#allocation4], %s224_s11, %s224_s11, %s225_s12  }
   0x5   :  { %219 = dma.done.wait [#allocation4], 1152  }
   0x6   :  { %220 = vsyncadd [#allocation4], 4294966144  ;;  %v51_v0 = vld [vmem:[#allocation3 + $0x18] sm:$0xff]  ;;  %v55_v1 = vld [vmem:[#allocation3 + $0x28] sm:$0xff]  ;;  %v34_v43 = vlaneseq  ;;  %s226_s0 = smov [#allocation6]   ;;  %s149_s16 = sshll.u32 %s256_s1, 4  ;;  %s150_s16 = int_to_ptr.hbm [resolvable:$true] %s149_s16 }
   0x7   :  { %v61_v2 = vld [vmem:[#allocation3 + $0x40] sm:$0xff]  ;;  %163 = vrcp.f32 %v51_v0  ;;  %vm67_vm0 = vweird.f32 %v51_v0  ;;  %v73_v7 = vand.u32 2147483648, %v51_v0  ;;  %v71_v10 = vand.u32 2147483647, %v51_v0  ;;  %v57_v29 = vld [vmem:[#allocation3 + $0x30] sm:$0xff]  ;;  %v47_v34 = vld [vmem:[#allocation3 + $0x8] sm:$0xff] }
   0x8   :  { %165 = vrcp.f32 %v55_v1  ;;  %v118_v13 = vmul.f32 %v55_v1, %v51_v0  ;;  %vm84_vm2 = vweird.f32 %v55_v1  ;;  %v90_v19 = vand.u32 2147483648, %v55_v1  ;;  %v45_v22 = vld [vmem:[#allocation3] sm:$0xff]  ;;  %v49_v40 = vld [vmem:[#allocation3 + $0x10] sm:$0xff]  ;;  %v59_v44 = vld [vmem:[#allocation3 + $0x38] sm:$0xff]  ;;  %s147_s13 = sshll.u32 %s226_s0, 4  ;;  %s148_s13 = int_to_ptr.vmem [resolvable:$true] %s147_s13 }
   0x9   :  { %167 = vrcp.f32 %v61_v2  ;;  %v74_v17 = vor.u32 1.1754944e-38, %v73_v7  ;;  %vm72_vm5 = vcmp.eq.f32.partialorder %v71_v10, 8.507059e+37  ;;  %v88_v21 = vand.u32 2147483647, %v55_v1  ;;  %v53_v28 = vld [vmem:[#allocation3 + $0x20] sm:$0xff] }
   0xa   :  { %v119_v25 = vmul.f32 %v118_v13, %v61_v2  ;;  %v91_v31 = vor.u32 1.1754944e-38, %v90_v19  ;;  %vm103_vm7 = vweird.f32 %v61_v2  ;;  %v109_v35 = vand.u32 2147483648, %v61_v2 }
   0xb   :  { %vm89_vm8 = vcmp.eq.f32.partialorder %v88_v21, 8.507059e+37  ;;  %v107_v39 = vand.u32 2147483647, %v61_v2  ;;  %v35_v53 = vshrl.u32 %v34_v43, 7  ;;  %v37_v59 = vand.u32 127, %v34_v43 }
   0xc   :  { %169 = vlog2.f32 %v119_v25  ;;  %v110_v45 = vor.u32 1.1754944e-38, %v109_v35 }
   0xd   :  { %v164_v3 = vpop.eup %163  ;;  %vm108_vm11 = vcmp.eq.f32.partialorder %v107_v39, 8.507059e+37  ;;  %v42_v60 = vmul.u32 128, %v35_v53 }
   0xe   :  { %v166_v4 = vpop.eup %165  ;;  %v63_v5 = vmul.f32 %v164_v3, %v51_v0  ;;  %vm68_vm1 = vweird.f32 %v164_v3 }
   0xf   :  { %v168_v6 = vpop.eup %167  ;;  %v80_v8 = vmul.f32 %v166_v4, %v55_v1  ;;  %vm85_vm3 = vweird.f32 %v166_v4  ;;  %vm240_vm4 = vmor %vm67_vm0, %vm68_vm1  ;;  %v43_v0 = vadd.s32 %v42_v60, %v37_v59 }
  0x10   :  { %v64_v9 = vsub.f32 1.0, %v63_v5  ;;  %v99_v11 = vmul.f32 %v168_v6, %v61_v2  ;;  %vm244_vm6 = vmor %vm84_vm2, %vm85_vm3  ;;  %vm104_vm9 = vweird.f32 %v168_v6 }
  0x11   :  { %v81_v12 = vsub.f32 1.0, %v80_v8  ;;  %vm105_vm10 = vmor %vm103_vm7, %vm104_vm9  ;;  %vm44_vm12 = vcmp.lt.s32.totalorder %v43_v0, 64 }
  0x12   :  { %v65_v14 = vmul.f32 %v164_v3, %v64_v9  ;;  %v100_v15 = vsub.f32 1.0, %v99_v11  ;;  %v170_v49 = vpop.eup %169 }
  0x13   :  { %v82_v18 = vmul.f32 %v166_v4, %v81_v12  ;;  %v121_v56 = vmul.f32 0.6931472, %v170_v49 }
  0x14   :  { %v66_v20 = vadd.f32 %v164_v3, %v65_v14  ;;  %v101_v27 = vmul.f32 %v168_v6, %v100_v15 }
  0x15   :  { %v83_v23 = vadd.f32 %v166_v4, %v82_v18  ;;  %v122_v62 = vmul.f32 2.0, %v121_v56 }
  0x16   :  { %v70_v26 = vsel %vm240_vm4, %v164_v3, %v66_v20  ;;  %v102_v38 = vadd.f32 %v168_v6, %v101_v27 }
  0x17   :  { %v75_v30 = vsel %vm72_vm5, %v74_v17, %v70_v26  ;;  %v87_v33 = vsel %vm244_vm6, %v166_v4, %v83_v23 }
  0x18   :  { %v76_v32 = vmul.f32 %v75_v30, %v45_v22  ;;  %v92_v41 = vsel %vm89_vm8, %v91_v31, %v87_v33  ;;  %v106_v48 = vsel %vm105_vm10, %v168_v6, %v102_v38 }
  0x19   :  { %v111_v54 = vsel %vm108_vm11, %v110_v45, %v106_v48 }
  0x1a   :  { %v77_v36 = vmul.f32 %v76_v32, %v53_v28  ;;  %v94_v37 = vmul.f32 %v76_v32, %v57_v29  ;;  %v113_v51 = vmul.f32 %v76_v32, %v76_v32 }
  0x1c   :  { %v78_v42 = vsub.f32 %v47_v34, %v77_v36  ;;  %v95_v47 = vsub.f32 %v49_v40, %v94_v37 }
  0x1e   :  { %v93_v46 = vmul.f32 %v92_v41, %v78_v42 }
  0x20   :  { %v96_v50 = vmul.f32 %v93_v46, %v59_v44  ;;  %v114_v52 = vmul.f32 %v93_v46, %v93_v46 }
  0x22   :  { %v97_v55 = vsub.f32 %v95_v47, %v96_v50  ;;  %v115_v58 = vadd.f32 %v114_v52, %v113_v51 }
  0x24   :  { %v112_v57 = vmul.f32 %v111_v54, %v97_v55 }
  0x26   :  { %v116_v61 = vmul.f32 %v112_v57, %v112_v57 }
  0x28   :  { %v117_v63 = vadd.f32 %v116_v61, %v115_v58 }
  0x2a   :  { %v123_v1 = vadd.f32 %v122_v62, %v117_v63 }
  0x2c   :  { %v124_v2 = vadd.f32 5.5136313, %v123_v1 }
  0x2e   :  { %v125_v3 = vmul.f32 0.5, %v124_v2 }
  0x30   :  { %v126_v4 = vsel %vm44_vm12, %v125_v3, 0.0 }
  0x31   :  { %v135_v5 = vrot.slane %v126_v4, 4 }
  0x33   :  { %v136_v6 = vadd.f32 %v135_v5, %v126_v4 }
  0x35   :  { %v137_v7 = vrot.slane %v136_v6, 2 }
  0x37   :  { %v138_v8 = vadd.f32 %v137_v7, %v136_v6 }
  0x39   :  { %v139_v9 = vrot.slane %v138_v8, 1 }
  0x3b   :  { %v140_v10 = vadd.f32 %v139_v9, %v138_v8 }
  0x3d   :  { %141 = vst [vmem:[#allocation6] sm:$0x1] %v140_v10 }
  0x3e   :  { %152 = dma.vmem_to_hbm [thread:$0]  %s148_s13, 16, %s150_s16, [#allocation5]  }
  0x3f   :  { %221 = dma.done.wait [#allocation5], 16  }
  0x40   :  { %222 = vsyncadd [#allocation5], 4294967280 }
  0x41   :  { %157 = vsyncpa [#allocation4], 1 }
  0x42   :  { %158 = vsyncpa [#allocation5], 1 }

</bundles_post_ra>
